<compile_context>
chip_gen: v7x
topology: tpu7x:2x2x1
jax: 0.10.0
libtpu: 0.0.40
codegen_flags: <defaults>
</compile_context>

<pallas_src>
import functools
import math

import jax
import jax.numpy as jnp
from jax.experimental import pallas as pl
from jax.experimental.pallas import tpu as pltpu


def _self_attention_kernel(x_ref, wqkv_ref, bqkv_ref, wo_ref, bo_ref,
                           o_ref, qkv_ref, heads_ref,
                           *, n_heads, head_dim, q_block):
    # x_ref   : (S, D)   full sequence for this batch element
    # qkv_ref : (S, 3D)  VMEM scratch holding [Q(scaled) | K | V], per batch
    # heads_ref: (tq, D) VMEM slab for the concatenated head outputs
    d_model = n_heads * head_dim
    qi = pl.program_id(1)

    # Fused Q|K|V projection for the whole sequence, once per batch element.
    # (The 1/sqrt(head_dim) scale is already folded into the Q columns.)
    @pl.when(qi == 0)
    def _():
        qkv_ref[...] = (
            jnp.dot(x_ref[...], wqkv_ref[...],
                    preferred_element_type=jnp.float32)
            + bqkv_ref[...])

    # Query rows for this tile (already scaled); K / V span the full sequence.
    q_start = pl.multiple_of(qi * q_block, q_block)
    q = qkv_ref[pl.ds(q_start, q_block), 0:d_model]               # (tq, D)
    k = qkv_ref[:, d_model:2 * d_model]                           # (S,  D)
    v = qkv_ref[:, 2 * d_model:]                                  # (S,  D)

    # Per-head attention (static unrolled loop); results land in the VMEM
    # scratch slab so no lane-axis concatenate is needed.
    for h in range(n_heads):
        sl = slice(h * head_dim, (h + 1) * head_dim)
        qh = q[:, sl]                                             # (tq, hd)
        kh = k[:, sl]                                             # (S,  hd)
        vh = v[:, sl]                                             # (S,  hd)

        # Contract over head_dim directly (no explicit K transpose).
        scores = jax.lax.dot_general(
            qh, kh, (((1,), (1,)), ((), ())),
            preferred_element_type=jnp.float32)                   # (tq, S)

        # Numerically stable softmax; normalize after p @ v so the rescale
        # touches (tq, hd) instead of (tq, S).
        m = jnp.max(scores, axis=-1, keepdims=True)
        e = jnp.exp(scores - m)
        s = jnp.sum(e, axis=-1, keepdims=True)
        oh = jnp.dot(e, vh, preferred_element_type=jnp.float32)   # (tq, hd)
        heads_ref[:, sl] = oh * pl.reciprocal(s, approx=False)

    # Output projection from the concatenated heads.
    out = (jnp.dot(heads_ref[...], wo_ref[...],
                   preferred_element_type=jnp.float32) + bo_ref[...])
    o_ref[...] = out.astype(o_ref.dtype)


def self_attention(x, params, *, n_heads, q_block=None):
    """x: (B, S, D) float32.  params: wq/wk/wv/wo (D, D), bq/bk/bv/bo (1, D)."""
    B, S, D = x.shape
    assert D % n_heads == 0
    head_dim = D // n_heads

    # Query-tile size: full sequence for small S, otherwise block it.
    if q_block is None:
        q_block = S if S <= 256 else 256
    assert S % q_block == 0, "seq_len must be divisible by the query block"
    n_qblocks = S // q_block

    # Host-side fusion of the Q, K and V projections into one (D, 3D) weight,
    # with the 1/sqrt(head_dim) scale folded into the Q columns (free).
    scale = 1.0 / math.sqrt(head_dim)
    wqkv = jnp.concatenate(
        [params["wq"] * scale, params["wk"], params["wv"]], axis=1)  # (D, 3D)
    bqkv = jnp.concatenate(
        [params["bq"] * scale, params["bk"], params["bv"]], axis=1)  # (1, 3D)

    kernel = functools.partial(
        _self_attention_kernel,
        n_heads=n_heads, head_dim=head_dim, q_block=q_block)

    # Grid-invariant weight/bias specs (DMA'd once, block index never changes).
    def const_spec(shape):
        return pl.BlockSpec(shape, lambda b, qi: (0, 0))

    return pl.pallas_call(
        kernel,
        out_shape=jax.ShapeDtypeStruct((B, S, D), x.dtype),
        grid_spec=pltpu.PrefetchScalarGridSpec(
            num_scalar_prefetch=0,
            grid=(B, n_qblocks),
            in_specs=[
                # Full sequence for this batch (batch dim squeezed out);
                # block index constant across qi -> fetched once per batch.
                pl.BlockSpec((None, S, D), lambda b, qi: (b, 0, 0)),
                const_spec((D, 3 * D)),   # W_q*scale | W_k | W_v fused
                const_spec((1, 3 * D)),   # b_q*scale | b_k | b_v fused
                const_spec((D, D)),       # W_o
                const_spec((1, D)),       # b_o
            ],
            out_specs=pl.BlockSpec((None, q_block, D),
                                   lambda b, qi: (b, qi, 0)),
            scratch_shapes=[
                pltpu.VMEM((S, 3 * D), jnp.float32),      # per-batch QKV cache
                pltpu.VMEM((q_block, D), jnp.float32),    # concat head outputs
            ],
        ),
        compiler_params=pltpu.CompilerParams(
            dimension_semantics=("parallel", "arbitrary")),
    )(x, wqkv, bqkv, params["wo"], params["bo"])


def _reference(x, params, n_heads):
    """Plain-JAX reference matching the PyTorch forward semantics."""
    B, S, D = x.shape
    hd = D // n_heads

    def lin(z, w, b):
        return jnp.einsum("bsd,de->bse", z, w) + b[0]

    q = lin(x, params["wq"], params["bq"]).reshape(B, S, n_heads, hd).transpose(0, 2, 1, 3)
    k = lin(x, params["wk"], params["bk"]).reshape(B, S, n_heads, hd).transpose(0, 2, 1, 3)
    v = lin(x, params["wv"], params["bv"]).reshape(B, S, n_heads, hd).transpose(0, 2, 1, 3)
    attn = jnp.einsum("bhqd,bhkd->bhqk", q, k) / math.sqrt(hd)
    attn = jax.nn.softmax(attn, axis=-1)
    out = jnp.einsum("bhqk,bhkd->bhqd", attn, v)
    out = out.transpose(0, 2, 1, 3).reshape(B, S, D)
    return lin(out, params["wo"], params["bo"])


if __name__ == "__main__":
    B, S, D, H = 2, 8, 32, 4

    key = jax.random.PRNGKey(0)
    keys = jax.random.split(key, 9)

    x = jax.random.normal(keys[0], (B, S, D), dtype=jnp.float32)

    def init_linear(kw, kb, d_in, d_out):
        bound = 1.0 / math.sqrt(d_in)
        w = jax.random.uniform(kw, (d_in, d_out), jnp.float32, -bound, bound)
        b = jax.random.uniform(kb, (1, d_out), jnp.float32, -bound, bound)
        return w, b

    wq, bq = init_linear(keys[1], keys[2], D, D)
    wk, bk = init_linear(keys[3], keys[4], D, D)
    wv, bv = init_linear(keys[5], keys[6], D, D)
    wo, bo = init_linear(keys[7], keys[8], D, D)

    params = dict(wq=wq, bq=bq, wk=wk, bk=bk, wv=wv, bv=bv, wo=wo, bo=bo)

    out = self_attention(x, params, n_heads=H)
    out = jax.block_until_ready(out)

    ref = _reference(x, params, H)
    assert out.shape == (B, S, D)
    assert jnp.allclose(out, ref, atol=1e-5, rtol=1e-5), "mismatch vs reference"

    print("KERNEL_OK")
</pallas_src>

<mosaic_0001>
module attributes {stable_mosaic.version = 11 : i64} {
  func.func @_self_attention_kernel(%arg0: i32, %arg1: i32, %arg2: memref<1x8x32xf32, #tpu.memory_space<vmem>>, %arg3: memref<32x96xf32, #tpu.memory_space<vmem>>, %arg4: memref<1x96xf32, #tpu.memory_space<vmem>>, %arg5: memref<32x32xf32, #tpu.memory_space<vmem>>, %arg6: memref<1x32xf32, #tpu.memory_space<vmem>>, %arg7: memref<1x8x32xf32, #tpu.memory_space<vmem>>, %arg8: memref<8x96xf32, #tpu.memory_space<vmem>>, %arg9: memref<8x32xf32, #tpu.memory_space<vmem>>) attributes {dimension_semantics = [#tpu.dimension_semantics<parallel>, #tpu.dimension_semantics<arbitrary>], iteration_bounds = array<i64: 2, 1>, scalar_prefetch = 0 : i64, scratch_operands = 2 : i64, tpu.core_type = #tpu.core_type<tc>, window_params = [{transform_indices = @transform_0, window_bounds = array<i64: 1, 8, 32>}, {pipeline_mode = #tpu.pipeline_mode<synchronous>, transform_indices = @transform_1, window_bounds = array<i64: 32, 96>}, {pipeline_mode = #tpu.pipeline_mode<synchronous>, transform_indices = @transform_2, window_bounds = array<i64: 1, 96>}, {pipeline_mode = #tpu.pipeline_mode<synchronous>, transform_indices = @transform_3, window_bounds = array<i64: 32, 32>}, {pipeline_mode = #tpu.pipeline_mode<synchronous>, transform_indices = @transform_4, window_bounds = array<i64: 1, 32>}, {transform_indices = @transform_5, window_bounds = array<i64: 1, 8, 32>}]} {
    %c0_i32 = arith.constant 0 : i32
    %0 = arith.cmpi eq, %arg1, %c0_i32 : i32
    %1 = arith.extui %0 : i1 to i32
    %c0_i32_0 = arith.constant 0 : i32
    %2 = arith.cmpi ne, %1, %c0_i32_0 : i32
    scf.if %2 {
      %c0_33 = arith.constant 0 : index
      %c0_34 = arith.constant 0 : index
      %c0_35 = arith.constant 0 : index
      %82 = vector.load %arg2[%c0_33, %c0_34, %c0_35] : memref<1x8x32xf32, #tpu.memory_space<vmem>>, vector<1x8x32xf32>
      %83 = vector.shape_cast %82 : vector<1x8x32xf32> to vector<8x32xf32>
      %c0_36 = arith.constant 0 : index
      %c0_37 = arith.constant 0 : index
      %84 = vector.load %arg3[%c0_36, %c0_37] : memref<32x96xf32, #tpu.memory_space<vmem>>, vector<32x96xf32>
      %cst_38 = arith.constant dense<0.000000e+00> : vector<8x96xf32>
      %85 = tpu.matmul %83, %84, %cst_38 {dimension_numbers = #tpu.dot_dimension_numbers<[1], [0], [0], [1], [0, 0, 1, 1], [], []>} : vector<8x32xf32>, vector<32x96xf32>, vector<8x96xf32> -> vector<8x96xf32>
      %c0_39 = arith.constant 0 : index
      %c0_40 = arith.constant 0 : index
      %86 = vector.load %arg4[%c0_39, %c0_40] : memref<1x96xf32, #tpu.memory_space<vmem>>, vector<1x96xf32>
      %87 = vector.broadcast %86 : vector<1x96xf32> to vector<8x96xf32>
      %88 = arith.addf %85, %87 : vector<8x96xf32>
      %c0_41 = arith.constant 0 : index
      %c0_42 = arith.constant 0 : index
      %89 = vector.load %arg8[%c0_41, %c0_42] : memref<8x96xf32, #tpu.memory_space<vmem>>, vector<8x96xf32>
      tpu.vector_store %arg8[%c0_41, %c0_42], %88 {strides = array<i32>} : memref<8x96xf32, #tpu.memory_space<vmem>>, vector<8x96xf32>,
    } else {
    }
    %c8_i32 = arith.constant 8 : i32
    %3 = arith.muli %arg1, %c8_i32 : i32
    %4 = tpu.assume_multiple %3, 8 : i32
    %5 = arith.index_cast %4 : i32 to index
    %c0 = arith.constant 0 : index
    %6 = vector.load %arg8[%5, %c0] : memref<8x96xf32, #tpu.memory_space<vmem>>, vector<8x32xf32>
    %c0_1 = arith.constant 0 : index
    %c32 = arith.constant 32 : index
    %7 = vector.load %arg8[%c0_1, %c32] : memref<8x96xf32, #tpu.memory_space<vmem>>, vector<8x32xf32>
    %c0_2 = arith.constant 0 : index
    %c64 = arith.constant 64 : index
    %8 = vector.load %arg8[%c0_2, %c64] : memref<8x96xf32, #tpu.memory_space<vmem>>, vector<8x32xf32>
    %9 = vector.extract_strided_slice %6 {offsets = [0, 0], sizes = [8, 8], strides = [1, 1]} : vector<8x32xf32> to vector<8x8xf32>
    %10 = vector.extract_strided_slice %7 {offsets = [0, 0], sizes = [8, 8], strides = [1, 1]} : vector<8x32xf32> to vector<8x8xf32>
    %11 = vector.extract_strided_slice %8 {offsets = [0, 0], sizes = [8, 8], strides = [1, 1]} : vector<8x32xf32> to vector<8x8xf32>
    %cst = arith.constant dense<0.000000e+00> : vector<8x8xf32>
    %12 = tpu.matmul %9, %10, %cst {dimension_numbers = #tpu.dot_dimension_numbers<[1], [1], [0], [0], [0, 0, 1, 0], [], []>} : vector<8x8xf32>, vector<8x8xf32>, vector<8x8xf32> -> vector<8x8xf32>
    %cst_3 = arith.constant dense<0xFF800000> : vector<8xf32>
    %13 = vector.multi_reduction <maximumf>, %12, %cst_3 [1] : vector<8x8xf32> to vector<8xf32>
    %14 = vector.shape_cast %13 : vector<8xf32> to vector<8x1xf32>
    %15 = vector.broadcast %14 : vector<8x1xf32> to vector<8x8xf32>
    %16 = arith.subf %12, %15 : vector<8x8xf32>
    %17 = math.exp %16 : vector<8x8xf32>
    %cst_4 = arith.constant dense<0.000000e+00> : vector<8xf32>
    %18 = vector.multi_reduction <add>, %17, %cst_4 [1] : vector<8x8xf32> to vector<8xf32>
    %19 = vector.shape_cast %18 : vector<8xf32> to vector<8x1xf32>
    %cst_5 = arith.constant dense<0.000000e+00> : vector<8x8xf32>
    %20 = tpu.matmul %17, %11, %cst_5 {dimension_numbers = #tpu.dot_dimension_numbers<[1], [0], [0], [1], [0, 0, 1, 1], [], []>} : vector<8x8xf32>, vector<8x8xf32>, vector<8x8xf32> -> vector<8x8xf32>
    %21 = tpu.reciprocal %19 : vector<8x1xf32> -> vector<8x1xf32>
    %22 = vector.broadcast %21 : vector<8x1xf32> to vector<8x8xf32>
    %23 = arith.mulf %20, %22 : vector<8x8xf32>
    %c0_6 = arith.constant 0 : index
    %c0_7 = arith.constant 0 : index
    %24 = vector.load %arg9[%c0_6, %c0_7] : memref<8x32xf32, #tpu.memory_space<vmem>>, vector<8x8xf32>
    tpu.vector_store %arg9[%c0_6, %c0_7], %23 {strides = array<i32>} : memref<8x32xf32, #tpu.memory_space<vmem>>, vector<8x8xf32>,
    %25 = vector.extract_strided_slice %6 {offsets = [0, 8], sizes = [8, 8], strides = [1, 1]} : vector<8x32xf32> to vector<8x8xf32>
    %26 = vector.extract_strided_slice %7 {offsets = [0, 8], sizes = [8, 8], strides = [1, 1]} : vector<8x32xf32> to vector<8x8xf32>
    %27 = vector.extract_strided_slice %8 {offsets = [0, 8], sizes = [8, 8], strides = [1, 1]} : vector<8x32xf32> to vector<8x8xf32>
    %cst_8 = arith.constant dense<0.000000e+00> : vector<8x8xf32>
    %28 = tpu.matmul %25, %26, %cst_8 {dimension_numbers = #tpu.dot_dimension_numbers<[1], [1], [0], [0], [0, 0, 1, 0], [], []>} : vector<8x8xf32>, vector<8x8xf32>, vector<8x8xf32> -> vector<8x8xf32>
    %cst_9 = arith.constant dense<0xFF800000> : vector<8xf32>
    %29 = vector.multi_reduction <maximumf>, %28, %cst_9 [1] : vector<8x8xf32> to vector<8xf32>
    %30 = vector.shape_cast %29 : vector<8xf32> to vector<8x1xf32>
    %31 = vector.broadcast %30 : vector<8x1xf32> to vector<8x8xf32>
    %32 = arith.subf %28, %31 : vector<8x8xf32>
    %33 = math.exp %32 : vector<8x8xf32>
    %cst_10 = arith.constant dense<0.000000e+00> : vector<8xf32>
    %34 = vector.multi_reduction <add>, %33, %cst_10 [1] : vector<8x8xf32> to vector<8xf32>
    %35 = vector.shape_cast %34 : vector<8xf32> to vector<8x1xf32>
    %cst_11 = arith.constant dense<0.000000e+00> : vector<8x8xf32>
    %36 = tpu.matmul %33, %27, %cst_11 {dimension_numbers = #tpu.dot_dimension_numbers<[1], [0], [0], [1], [0, 0, 1, 1], [], []>} : vector<8x8xf32>, vector<8x8xf32>, vector<8x8xf32> -> vector<8x8xf32>
    %37 = tpu.reciprocal %35 : vector<8x1xf32> -> vector<8x1xf32>
    %38 = vector.broadcast %37 : vector<8x1xf32> to vector<8x8xf32>
    %39 = arith.mulf %36, %38 : vector<8x8xf32>
    %c0_12 = arith.constant 0 : index
    %c8 = arith.constant 8 : index
    %40 = vector.load %arg9[%c0_12, %c8] : memref<8x32xf32, #tpu.memory_space<vmem>>, vector<8x8xf32>
    tpu.vector_store %arg9[%c0_12, %c8], %39 {strides = array<i32>} : memref<8x32xf32, #tpu.memory_space<vmem>>, vector<8x8xf32>,
    %41 = vector.extract_strided_slice %6 {offsets = [0, 16], sizes = [8, 8], strides = [1, 1]} : vector<8x32xf32> to vector<8x8xf32>
    %42 = vector.extract_strided_slice %7 {offsets = [0, 16], sizes = [8, 8], strides = [1, 1]} : vector<8x32xf32> to vector<8x8xf32>
    %43 = vector.extract_strided_slice %8 {offsets = [0, 16], sizes = [8, 8], strides = [1, 1]} : vector<8x32xf32> to vector<8x8xf32>
    %cst_13 = arith.constant dense<0.000000e+00> : vector<8x8xf32>
    %44 = tpu.matmul %41, %42, %cst_13 {dimension_numbers = #tpu.dot_dimension_numbers<[1], [1], [0], [0], [0, 0, 1, 0], [], []>} : vector<8x8xf32>, vector<8x8xf32>, vector<8x8xf32> -> vector<8x8xf32>
    %cst_14 = arith.constant dense<0xFF800000> : vector<8xf32>
    %45 = vector.multi_reduction <maximumf>, %44, %cst_14 [1] : vector<8x8xf32> to vector<8xf32>
    %46 = vector.shape_cast %45 : vector<8xf32> to vector<8x1xf32>
    %47 = vector.broadcast %46 : vector<8x1xf32> to vector<8x8xf32>
    %48 = arith.subf %44, %47 : vector<8x8xf32>
    %49 = math.exp %48 : vector<8x8xf32>
    %cst_15 = arith.constant dense<0.000000e+00> : vector<8xf32>
    %50 = vector.multi_reduction <add>, %49, %cst_15 [1] : vector<8x8xf32> to vector<8xf32>
    %51 = vector.shape_cast %50 : vector<8xf32> to vector<8x1xf32>
    %cst_16 = arith.constant dense<0.000000e+00> : vector<8x8xf32>
    %52 = tpu.matmul %49, %43, %cst_16 {dimension_numbers = #tpu.dot_dimension_numbers<[1], [0], [0], [1], [0, 0, 1, 1], [], []>} : vector<8x8xf32>, vector<8x8xf32>, vector<8x8xf32> -> vector<8x8xf32>
    %53 = tpu.reciprocal %51 : vector<8x1xf32> -> vector<8x1xf32>
    %54 = vector.broadcast %53 : vector<8x1xf32> to vector<8x8xf32>
    %55 = arith.mulf %52, %54 : vector<8x8xf32>
    %c0_17 = arith.constant 0 : index
    %c16 = arith.constant 16 : index
    %56 = vector.load %arg9[%c0_17, %c16] : memref<8x32xf32, #tpu.memory_space<vmem>>, vector<8x8xf32>
    tpu.vector_store %arg9[%c0_17, %c16], %55 {strides = array<i32>} : memref<8x32xf32, #tpu.memory_space<vmem>>, vector<8x8xf32>,
    %57 = vector.extract_strided_slice %6 {offsets = [0, 24], sizes = [8, 8], strides = [1, 1]} : vector<8x32xf32> to vector<8x8xf32>
    %58 = vector.extract_strided_slice %7 {offsets = [0, 24], sizes = [8, 8], strides = [1, 1]} : vector<8x32xf32> to vector<8x8xf32>
    %59 = vector.extract_strided_slice %8 {offsets = [0, 24], sizes = [8, 8], strides = [1, 1]} : vector<8x32xf32> to vector<8x8xf32>
    %cst_18 = arith.constant dense<0.000000e+00> : vector<8x8xf32>
    %60 = tpu.matmul %57, %58, %cst_18 {dimension_numbers = #tpu.dot_dimension_numbers<[1], [1], [0], [0], [0, 0, 1, 0], [], []>} : vector<8x8xf32>, vector<8x8xf32>, vector<8x8xf32> -> vector<8x8xf32>
    %cst_19 = arith.constant dense<0xFF800000> : vector<8xf32>
    %61 = vector.multi_reduction <maximumf>, %60, %cst_19 [1] : vector<8x8xf32> to vector<8xf32>
    %62 = vector.shape_cast %61 : vector<8xf32> to vector<8x1xf32>
    %63 = vector.broadcast %62 : vector<8x1xf32> to vector<8x8xf32>
    %64 = arith.subf %60, %63 : vector<8x8xf32>
    %65 = math.exp %64 : vector<8x8xf32>
    %cst_20 = arith.constant dense<0.000000e+00> : vector<8xf32>
    %66 = vector.multi_reduction <add>, %65, %cst_20 [1] : vector<8x8xf32> to vector<8xf32>
    %67 = vector.shape_cast %66 : vector<8xf32> to vector<8x1xf32>
    %cst_21 = arith.constant dense<0.000000e+00> : vector<8x8xf32>
    %68 = tpu.matmul %65, %59, %cst_21 {dimension_numbers = #tpu.dot_dimension_numbers<[1], [0], [0], [1], [0, 0, 1, 1], [], []>} : vector<8x8xf32>, vector<8x8xf32>, vector<8x8xf32> -> vector<8x8xf32>
    %69 = tpu.reciprocal %67 : vector<8x1xf32> -> vector<8x1xf32>
    %70 = vector.broadcast %69 : vector<8x1xf32> to vector<8x8xf32>
    %71 = arith.mulf %68, %70 : vector<8x8xf32>
    %c0_22 = arith.constant 0 : index
    %c24 = arith.constant 24 : index
    %72 = vector.load %arg9[%c0_22, %c24] : memref<8x32xf32, #tpu.memory_space<vmem>>, vector<8x8xf32>
    tpu.vector_store %arg9[%c0_22, %c24], %71 {strides = array<i32>} : memref<8x32xf32, #tpu.memory_space<vmem>>, vector<8x8xf32>,
    %c0_23 = arith.constant 0 : index
    %c0_24 = arith.constant 0 : index
    %73 = vector.load %arg9[%c0_23, %c0_24] : memref<8x32xf32, #tpu.memory_space<vmem>>, vector<8x32xf32>
    %c0_25 = arith.constant 0 : index
    %c0_26 = arith.constant 0 : index
    %74 = vector.load %arg5[%c0_25, %c0_26] : memref<32x32xf32, #tpu.memory_space<vmem>>, vector<32x32xf32>
    %cst_27 = arith.constant dense<0.000000e+00> : vector<8x32xf32>
    %75 = tpu.matmul %73, %74, %cst_27 {dimension_numbers = #tpu.dot_dimension_numbers<[1], [0], [0], [1], [0, 0, 1, 1], [], []>} : vector<8x32xf32>, vector<32x32xf32>, vector<8x32xf32> -> vector<8x32xf32>
    %c0_28 = arith.constant 0 : index
    %c0_29 = arith.constant 0 : index
    %76 = vector.load %arg6[%c0_28, %c0_29] : memref<1x32xf32, #tpu.memory_space<vmem>>, vector<1x32xf32>
    %77 = vector.broadcast %76 : vector<1x32xf32> to vector<8x32xf32>
    %78 = arith.addf %75, %77 : vector<8x32xf32>
    %c0_30 = arith.constant 0 : index
    %c0_31 = arith.constant 0 : index
    %c0_32 = arith.constant 0 : index
    %79 = vector.load %arg7[%c0_30, %c0_31, %c0_32] : memref<1x8x32xf32, #tpu.memory_space<vmem>>, vector<1x8x32xf32>
    %80 = vector.shape_cast %79 : vector<1x8x32xf32> to vector<8x32xf32>
    %81 = vector.shape_cast %78 : vector<8x32xf32> to vector<1x8x32xf32>
    tpu.vector_store %arg7[%c0_30, %c0_31, %c0_32], %81 {strides = array<i32>} : memref<1x8x32xf32, #tpu.memory_space<vmem>>, vector<1x8x32xf32>,
    return
  }
  func.func @transform_0(%arg0: i32, %arg1: i32) -> (i32, i32, i32) {
    %c0_i32 = arith.constant 0 : i32
    %c0_i32_0 = arith.constant 0 : i32
    %c0_i32_1 = arith.constant 0 : i32
    return %arg0, %c0_i32, %c0_i32_0 : i32, i32, i32
  }
  func.func @transform_1(%arg0: i32, %arg1: i32) -> (i32, i32) {
    %c0_i32 = arith.constant 0 : i32
    %c0_i32_0 = arith.constant 0 : i32
    %c0_i32_1 = arith.constant 0 : i32
    return %c0_i32, %c0_i32_0 : i32, i32
  }
  func.func @transform_2(%arg0: i32, %arg1: i32) -> (i32, i32) {
    %c0_i32 = arith.constant 0 : i32
    %c0_i32_0 = arith.constant 0 : i32
    %c0_i32_1 = arith.constant 0 : i32
    return %c0_i32, %c0_i32_0 : i32, i32
  }
  func.func @transform_3(%arg0: i32, %arg1: i32) -> (i32, i32) {
    %c0_i32 = arith.constant 0 : i32
    %c0_i32_0 = arith.constant 0 : i32
    %c0_i32_1 = arith.constant 0 : i32
    return %c0_i32, %c0_i32_0 : i32, i32
  }
  func.func @transform_4(%arg0: i32, %arg1: i32) -> (i32, i32) {
    %c0_i32 = arith.constant 0 : i32
    %c0_i32_0 = arith.constant 0 : i32
    %c0_i32_1 = arith.constant 0 : i32
    return %c0_i32, %c0_i32_0 : i32, i32
  }
  func.func @transform_5(%arg0: i32, %arg1: i32) -> (i32, i32, i32) {
    %c0_i32 = arith.constant 0 : i32
    %c0_i32_0 = arith.constant 0 : i32
    return %arg0, %arg1, %c0_i32 : i32, i32, i32
  }
}

</mosaic_0001>

<bundles_post_ra>
// kernel: tpu_custom_call.1
= control target key start
LH: loop header
LB: loop body
LE: loop exit
PB: predicated region body
PF: predicated region fallthrough
CT: control target
= control target key end

     0   :  { %10 = vsyncpa [#allocation5], 0  ;;  %s2069_s0 = inlined_call_operand.hbm [shape: f32[2,8,32], index: 0, kind: input, shape index: {}]   ;;  %s2070_s1 = inlined_call_operand.hbm [shape: f32[32,96], index: 1, kind: input, shape index: {}]   ;;  %s2071_s2 = inlined_call_operand.vmem [shape: f32[1,96], index: 2, kind: input, shape index: {}]   ;;  %s2072_s3 = inlined_call_operand.hbm [shape: f32[32,32], index: 3, kind: input, shape index: {}]   ;;  %s2073_s4 = inlined_call_operand.vmem [shape: f32[1,32], index: 4, kind: input, shape index: {}]   ;;  %s2074_s5 = inlined_call_operand.hbm [shape: f32[2,8,32], index: 5, kind: output, shape index: {}]  }
   0x1   :  { %12 = vsyncpa [#allocation5 + $0x1], 0 }
   0x2   :  { %13 = vsyncpa [#allocation8], 0 }
   0x3   :  { %14 = vsyncpa [#allocation6], 0 }
   0x4   :  { %16 = vsyncpa [#allocation6 + $0x1], 0  ;;  %s1739_s18 = smov 0   ;;  %s1741_s19 = smov 0  }
   0x5   :  { %s1743_s20 = smov 0   ;;  %s1745_s21 = smov 0  }
   0x6   :  { %s1747_s22 = smov 0   ;;  %s1749_s23 = smov 0  }
   0x7 LB: > { %s1261_s24 = sadd.s32 4294967295, %s1684_s23   ;;  %s1262_s25 = sadd.s32 4294967294, %s1684_s23   ;;  %s1684_s23 = sphi %s1749_s23, %s22_s23   ;;  %s1680_s22 = sphi %s1747_s22, %s2096_s22   ;;  %s1676_s21 = sphi %s1745_s21, %s2095_s21   ;;  %s1672_s20 = sphi %s1743_s20, %s2094_s20   ;;  %s1668_s19 = sphi %s1741_s19, %s2093_s19   ;;  %s1664_s18 = sphi %s1739_s18, %s2092_s18  }
   0x8   : > { %p54_p0 = scmp.ne.s32.totalorder %s1668_s19, %s1664_s18  ;;  %p1773_p1 = scmp.eq.s32.totalorder %s1261_s24, 0 }
   0x9   : > { %p1777_p2 = scmp.eq.s32.totalorder %s1261_s24, 1  ;;  %p170_p3 = scmp.eq.s32.totalorder %s1262_s25, 1 }
   0xa   : > { %s2079_s26 = scalar_select %p1773_p1, 1, 0 }
   0xb   : > { %p1783_p4 = por %p1773_p1, %p54_p0  ;;  %p1263_p5 = scmp.ge.s32.totalorder %s1684_s23, 1 }
   0xc   : > { %p1788_p6 = por %p170_p3, %p54_p0  ;;  %p177_p7 = scmp.lt.s32.totalorder %s1684_s23, 3 }
   0xd   : > { %s2081_s28 = scalar_select %p1783_p4, 1, 0 }
   0xe   : > { %s2082_s29 = scalar_select %p1788_p6, 1, 0 }
   0xf   : > { %p1793_p8 = pnand %p1263_p5, %p177_p7  ;;  %s1686_s6 = smov [#allocation7]  }
  0x10   : > { %s189_s7 = sshll.u32 %s1686_s6, 4  ;;  %s1687_s9 = smov [#allocation9]   ;;  %s1797_s7 = int_to_ptr.vmem [resolvable:$true] %s189_s7 }
  0x11   : > { %p1406_p9 = pneg %p1793_p8  ;;  %s205_s10 = sshll.u32 %s1687_s9, 4  ;;  %s1808_s10 = int_to_ptr.vmem [resolvable:$true] %s205_s10 }
  0x12   : > { %s1512_s13 = scalar_lea.hbm %s2070_s1, 512 }
  0x13   : > { %p1804_p11 = pnand %p1406_p9, %p1773_p1  ;;  %p1513_p12 = scmp.ne.s32.totalorder %s2070_s1, %s1512_s13 }
  0x14   : > { %p1519_p5 = scmp.lt.u32.totalorder %s1512_s13, %s2070_s1 }
  0x15   : > { %p1514_p13 = pneg %p1804_p11 }
  0x17   : > { %p1515_p0 = pnand %p1514_p13, %p1513_p12 }
  0x19   : > { %p1516_p3 = pneg %p1515_p0 }
  0x1b   : > { %p1521_p7 = pnand %p1519_p5, %p1516_p3 }
  0x1d   : > { %1524 = shalt.err (!%p1521_p7)
}
  0x1e   : > { %s1525_s24 = scalar_lea.vmem %s1797_s7, 512  ;;  %p1533_p1 = scmp.lt.s32.totalorder %s1797_s7, %s1797_s7 }
  0x1f   : > { %p1526_p9 = scmp.ne.s32.totalorder %s1797_s7, %s1525_s24  ;;  %p1534_p12 = scmp.lt.s32.totalorder %s1525_s24, %s1525_s24 }
  0x21   : > { %p1528_p10 = pnand %p1526_p9, %p1514_p13  ;;  %p1535_p0 = por %p1534_p12, %p1533_p1 }
  0x23   : > { %p1529_p6 = pneg %p1528_p10 }
  0x25   : > { %p1536_p4 = pnand %p1535_p0, %p1529_p6 }
  0x27   : > { %1539 = shalt.err (!%p1536_p4)
}
  0x28   : > { %s1688_s25 = smov 128   ;;  %s1689_s6 = smov 8  }
  0x29   : > { %1409 = dma.hbm_to_vmem [thread:$0]  (!%p1804_p11), %s2070_s1, 512, %s1797_s7, [#allocation8], %s1688_s25, %s1688_s25, %s1689_s6  }
  0x2a   : > { %s1540_s14 = scalar_lea.hbm %s2072_s3, 512 }
  0x2b   : > { %p1541_p1 = scmp.ne.s32.totalorder %s2072_s3, %s1540_s14  ;;  %p1547_p10 = scmp.lt.u32.totalorder %s1540_s14, %s2072_s3 }
  0x2d   : > { %p1543_p4 = pnand %p1541_p1, %p1514_p13 }
  0x2f   : > { %p1544_p6 = pneg %p1543_p4 }
  0x31   : > { %p1549_p3 = pnand %p1547_p10, %p1544_p6 }
  0x33   : > { %1552 = shalt.err (!%p1549_p3)
}
  0x34   : > { %s1553_s7 = scalar_lea.vmem %s1808_s10, 512  ;;  %p1561_p12 = scmp.lt.s32.totalorder %s1808_s10, %s1808_s10 }
  0x35   : > { %p1554_p5 = scmp.ne.s32.totalorder %s1808_s10, %s1553_s7  ;;  %p1562_p0 = scmp.lt.s32.totalorder %s1553_s7, %s1553_s7 }
  0x37   : > { %p1556_p7 = pnand %p1554_p5, %p1514_p13  ;;  %p1563_p1 = por %p1562_p0, %p1561_p12 }
  0x39   : > { %p1557_p9 = pneg %p1556_p7 }
  0x3b   : > { %p1564_p4 = pnand %p1563_p1, %p1557_p9 }
  0x3d   : > { %1567 = shalt.err (!%p1564_p4)
}
  0x3e   : > { %1412 = dma.hbm_to_vmem [thread:$0]  (!%p1804_p11), %s2072_s3, 512, %s1808_s10, [#allocation8], %s1688_s25, %s1688_s25, %s1689_s6  }
  0x3f   : > { %s34_s12 = sadd.s32 1, %s1680_s22  ;;  %s41_s13 = sadd.s32 1, %s1672_s20 }
  0x40   : > { %p36_p13 = scmp.ge.s32.totalorder %s34_s12, 2  ;;  %p48_p6 = scmp.ne.s32.totalorder %s1672_s20, %s1668_s19 }
  0x41   : > { %p49_p10 = scmp.eq.s32.totalorder %s1684_s23, 0  ;;  %p1423_p3 = scmp.lt.s32.totalorder %s1684_s23, 2 }
  0x42   : > { %s2098_s12 = smov (%p36_p13, %s34_s12), 0  ;;  %p1872_p7 = por %p1777_p2, %p48_p6 }
  0x43   : > { %p50_p5 = por %p49_p10, %p48_p6  ;;  %s38_s14 = ssub.s32 %s1680_s22, %s2098_s12 }
  0x44   : > { %s2085_s8 = scalar_select %p1872_p7, 1, 0 }
  0x45   : > { %s222_s15 = sand.u32 1, %s1672_s20   ;;  %p39_p9 = scmp.eq.s32.totalorder %s38_s14, 0 }
  0x46   : > { %s1267_s10 = sshll.u32 %s222_s15, 3  ;;  %s1268_s25 = sshll.u32 %s1680_s22, 7 }
  0x47   : > { %s1881_s6 = scalar_select %p39_p9, %s1672_s20, %s41_s13  }
  0x48   : > { %s1886_s24 = scalar_lea.hbm %s2069_s0, %s1268_s25  ;;  %s226_s27 = scalar_lea.vmem [#allocation4], %s1267_s10 }
  0x49   : > { %s233_s7 = sshll.u32 %s226_s27, 4  ;;  %p1890_p2 = pnand %p1423_p3, %p50_p5  ;;  %s1894_s7 = int_to_ptr.vmem [resolvable:$true] %s233_s7 }
  0x4a   : > { %s223_s11 = scalar_lea.sflag [#allocation5], %s222_s15  ;;  %s1568_s13 = scalar_lea.hbm %s1886_s24, 128 }
  0x4b   : > { %p1569_p11 = scmp.ne.s32.totalorder %s1886_s24, %s1568_s13  ;;  %p1570_p12 = pneg %p1890_p2 }
  0x4c   : > { %s1573_s25 = scalar_lea.hbm %s2069_s0, 256  ;;  %p1574_p4 = scmp.lt.u32.totalorder %s1886_s24, %s2069_s0 }
  0x4d   : > { %p1571_p0 = pnand %p1570_p12, %p1569_p11  ;;  %p1575_p13 = scmp.lt.u32.totalorder %s1573_s25, %s1568_s13 }
  0x4e   : > { %p1577_p10 = scmp.lt.u32.totalorder %s1568_s13, %s1886_s24 }
  0x4f   : > { %p1572_p1 = pneg %p1571_p0  ;;  %p1576_p6 = por %p1575_p13, %p1574_p4 }
  0x51   : > { %p1578_p3 = por %p1577_p10, %p1576_p6 }
  0x53   : > { %p1579_p5 = pnand %p1578_p3, %p1572_p1 }
  0x55   : > { %1582 = shalt.err (!%p1579_p5)
}
  0x56   : > { %s1583_s15 = scalar_lea.vmem %s1894_s7, 128  ;;  %s1690_s27 = smov [#allocation4]  }
  0x57   : > { %p1584_p9 = scmp.ne.s32.totalorder %s1894_s7, %s1583_s15  ;;  %s1588_s14 = sshll.u32 %s1690_s27, 4  ;;  %s1589_s14 = int_to_ptr.vmem [resolvable:$false] %s1588_s14 }
  0x58   : > { %s1590_s10 = scalar_lea.vmem %s1589_s14, 256  ;;  %p1591_p7 = scmp.lt.s32.totalorder %s1894_s7, %s1589_s14 }
  0x59   : > { %p1586_p11 = pnand %p1584_p9, %p1570_p12  ;;  %p1592_p4 = scmp.lt.s32.totalorder %s1590_s10, %s1583_s15 }
  0x5b   : > { %p1587_p0 = pneg %p1586_p11  ;;  %p1593_p13 = por %p1592_p4, %p1591_p7 }
  0x5d   : > { %p1594_p6 = pnand %p1593_p13, %p1587_p0 }
  0x5f   : > { %1597 = shalt.err (!%p1594_p6)
}
  0x60   : > { %1416 = dma.hbm_to_vmem [thread:$0]  (!%p1890_p2), %s1886_s24, 128, %s1894_s7, %s223_s11  }
  0x61   : > { %242 = sbr.rel (%p1793_p8) target bundleno = 1776 (0x6f0), region = 40  ;;  %s1924_s13 = sand.u32 (!%p1793_p8), 1, %s1668_s19  }
  0x62   : > { %s1270_s25 = sshll.u32 (!%p1793_p8), %s1924_s13, 3  ;;  %s245_s16 = scalar_lea.sflag (!%p1793_p8), [#allocation5], %s1924_s13 }
  0x63   : > { %s248_s17 = scalar_lea.vmem (!%p1793_p8), [#allocation4], %s1270_s25  ;;  %p2087_p7 = scmp.ne.s32.totalorder (!%p1793_p8), %s2081_s28, 0 }
  0x68   : > { %1651 = dma.done.wait (%p2087_p7), %s245_s16, 128  }
  0x69   : > { %1653 = vsyncadd (%p2087_p7), %s245_s16, 4294967168  ;;  %p2088_p2 = scmp.ne.s32.totalorder %s2079_s26, 0 }
  0x6b   : > { %1655 = dma.done.wait (%p2088_p2), [#allocation8], 1024  }
  0x6c   : > { %1657 = vsyncadd (%p2088_p2), [#allocation8], 4294966272  ;;  %v1691_v0 = vmov 0.0|0.0   ;;  %vm1692_vm0 = vmmov 0   ;;  %v1693_v1 = vmov 0.0   ;;  %v288_v2 = vld [vmem:[#allocation7] sm:$0xff] }
  0x6d   : > { %1382 = vmatprep.subr.bf16.mxu0 %v1691_v0  ;;  %1328 = vmatprep.mubr.msk.f32.mxu0 %vm1692_vm0, %v1693_v1  ;;  %v289_v3 = vld [vmem:[#allocation7 + $0x8] sm:$0xff]  ;;  %v290_v4 = vld [vmem:[#allocation7 + $0x10] sm:$0xff]  ;;  %v291_v6 = vld [vmem:[#allocation7 + $0x18] sm:$0xff]  ;;  %vm299_vm1 = vcmask 261120   ;;  %vm373_vm2 = vcmask 785408   ;;  %s1694_s30 = smov 64  }
  0x6e   : > { %1331 = vmatprep.subr.mxu1 %v1693_v1  ;;  %1333 = vmatprep.mubr.msk.f32.mxu1 %vm1692_vm0, %v1693_v1  ;;  %v1383_v5 = vpack.c.bf16 %v289_v3, %v288_v2  ;;  %v1386_v7 = vpack.c.bf16 %v291_v6, %v290_v4  ;;  %v287_v8 = vld [vmem:[%s248_s17] sm:$0xff]  ;;  %v1274_v9 = vld [vmem:[%s2071_s2] ss:$0 sm:$0xff]  ;;  %s1695_s24 = smov 96   ;;  %s1696_s7 = smov 88   ;;  %vm382_vm3 = vcmask 64512  }
  0x6f   : > { %s1697_s9 = smov 120   ;;  %s1698_s11 = smov 80   ;;  %v1060_v3 = vld [vmem:[#allocation9] sm:$0xff]  ;;  %v1061_v4 = vld [vmem:[#allocation9 + $0x8] sm:$0xff]  ;;  %v1063_v6 = vld [vmem:[#allocation9 + $0x18] sm:$0xff]  ;;  %vm715_vm4 = vcmask 130112  }
  0x70   : > { %1384 = vmatpush3.bf16.msra.mxu0 %v1383_v5  ;;  %s1699_s15 = smov 112   ;;  %s1700_s27 = smov 72   ;;  %v1062_v5 = vld [vmem:[#allocation9 + $0x10] sm:$0xff]  ;;  %vm886_vm5 = vcmask 195712   ;;  %vm1057_vm6 = vcmask 261312  }
  0x71   : > { %1385 = vmatprep.subr.bf16.mxu0 %v1691_v0  ;;  %s1701_s14 = smov 104   ;;  %s1702_s10 = smov 56  }
  0x72   : > { %s1703_s16 = smov 40   ;;  %s1704_s17 = smov 48  }
  0x73   : > { %s1705_s26 = smov 8   ;;  %s1706_s28 = smov 16  }
  0x74   : > { %1387 = vmatpush3.bf16.msra.mxu0 %v1386_v7  ;;  %p2089_p12 = scmp.ne.s32.totalorder %s2085_s8, 0 }
  0x75   : > { %1351 = vmatprep.subr.mxu0 %v1693_v1 }
  0x77   : > { %1329 = vmatmul.mubr.msk.f32.vlgmr.msra.gmra.mrb[0].mxu0 %vm299_vm1, %v287_v8 }
  0x78   : > { %1353 = vmatprep.mubr.msk.f32.mxu0 %vm1692_vm0, %v1693_v1 }
 0x14a   : > { %v369_v10 = vpop.f32.mrb[0].mxu0 }
 0x14b   : > { %v370_v11 = vadd.f32 %v1274_v9, %v369_v10  ;;  %v1330_v12 = vpop.f32.mrb[1].mxu0  ;;  %v1392_v9 = vpack.c.bf16 %v1063_v6, %v1062_v5 }
 0x14d   : > { %374 = vst.msk [vmem:[#allocation2] sm:$0xff] %vm373_vm2, %v370_v11 }
 0x154   : > { %v1952_v13 = vld [vmem:[#allocation2] sm:$0xff] }
 0x155   : > { %467 = vrot.lane.b32.xlu1 %v1952_v13, %s1694_s30  ;;  %380 = vrot.lane.b32.xlu0 %v1952_v13, %s1695_s24  ;;  %s1707_s30 = smov 24  }
 0x159   : > { %548 = vrot.lane.b32.xlu1 %v1952_v13, %s1696_s7 }
 0x15d   : > { %546 = vrot.lane.b32.xlu1 %v1952_v13, %s1697_s9  ;;  %s1291_s9 = sshll.u32 %s1676_s21, 7 }
 0x161   : > { %719 = vrot.lane.b32.xlu1 %v1952_v13, %s1698_s11  ;;  %s282_s11 = scalar_lea.vmem [#allocation10], %s1270_s25  ;;  %s1708_s25 = smov [#allocation10]  }
 0x165   : > { %717 = vrot.lane.b32.xlu1 %v1952_v13, %s1699_s15  ;;  %s1161_s15 = sshll.u32 %s282_s11, 4  ;;  %s2021_s15 = int_to_ptr.vmem [resolvable:$true] %s1161_s15 }
 0x166   : > { %s1598_s21 = scalar_lea.vmem %s2021_s15, 128 }
 0x167   : > { %p1599_p8 = scmp.ne.s32.totalorder %s2021_s15, %s1598_s21 }
 0x169   : > { %890 = vrot.lane.b32.xlu1 %v1952_v13, %s1700_s27  ;;  %p1600_p1 = pnand %p1599_p8, %p2089_p12 }
 0x16b   : > { %p1601_p10 = pneg %p1600_p1 }
 0x16d   : > { %888 = vrot.lane.b32.xlu1 %v1952_v13, %s1701_s14 }
 0x1c7   : > { %v468_v14 = vpop.permute.xlu1 %467  ;;  %v381_v15 = vpop.permute.xlu0 %380 }
 0x1c8   : > { %1332 = vmatpush3.xpose.msk.msra.mxu1 %vm382_vm3, %v381_v15 }
 0x1c9   : > { %1336 = vmatprep.subr.mxu1 %v1693_v1 }
 0x1cb   : > { %v549_v16 = vpop.permute.xlu1 %548  ;;  %1334 = vmatmul.mubr.msk.f32.vlgmr.msra.gmra.mrb[0].mxu1 %vm382_vm3, %v1952_v13 }
 0x1cc   : > { %1337 = vmatpush3.msra.mxu1 %v468_v14  ;;  %1338 = vmatprep.mubr.msk.f32.mxu1 %vm1692_vm0, %v1693_v1 }
 0x1cd   : > { %1341 = vmatprep.subr.mxu1 %v1693_v1 }
 0x1cf   : > { %v547_v17 = vpop.permute.xlu1 %546 }
 0x1d3   : > { %v720_v18 = vpop.permute.xlu1 %719 }
 0x1d4   : > { %1352 = vmatpush3.xpose.msk.msra.mxu0 %vm382_vm3, %v720_v18 }
 0x1d5   : > { %1361 = vmatprep.subr.mxu0 %v1693_v1 }
 0x1d7   : > { %v718_v19 = vpop.permute.xlu1 %717 }
 0x1d8   : > { %1354 = vmatmul.mubr.msk.f32.vlgmr.msra.gmra.mrb[2].mxu0 %vm382_vm3, %v718_v19 }
 0x1d9   : > { %1363 = vmatprep.mubr.msk.f32.mxu0 %vm1692_vm0, %v1693_v1 }
 0x1db   : > { %v891_v20 = vpop.permute.xlu1 %890 }
 0x1dc   : > { %1362 = vmatpush3.xpose.msk.msra.mxu0 %vm382_vm3, %v891_v20 }
 0x1dd   : > { %1388 = vmatprep.subr.bf16.mxu0 %v1691_v0 }
 0x1df   : > { %v889_v21 = vpop.permute.xlu1 %888 }
 0x1e0   : > { %1364 = vmatmul.mubr.msk.f32.vlgmr.msra.gmra.mrb[4].mxu0 %vm382_vm3, %v889_v21 }
 0x1e1   : > { %1379 = vmatprep.mubr.msk.f32.mxu0 %vm1692_vm0, %v1693_v1 }
 0x29e   : > { %v454_v22 = vpop.f32.mrb[0].mxu1 }
 0x29f   : > { %v1335_v23 = vpop.f32.mrb[1].mxu1  ;;  %v458_v24 = vsel %vm382_vm3, %v454_v22, -inf }
 0x2a0   : > { %459 = vmax.xlane.f32.xlu0 %v458_v24  ;;  %v1288_v23 = vld [vmem:[%s2073_s4] ss:$0 sm:$0xff] }
 0x2ab   : > { %v791_v25 = vpop.f32.mrb[2].mxu0 }
 0x2ac   : > { %v1355_v26 = vpop.f32.mrb[3].mxu0  ;;  %v795_v29 = vsel %vm382_vm3, %v791_v25, -inf }
 0x2b3   : > { %v962_v27 = vpop.f32.mrb[4].mxu0 }
 0x2b4   : > { %v1365_v28 = vpop.f32.mrb[5].mxu0  ;;  %v966_v30 = vsel %vm382_vm3, %v962_v27, -inf }
 0x2b6   : > { %633 = vrot.lane.b32.xlu0 %v1952_v13, %s1702_s10  ;;  %s2019_s10 = scalar_lea.hbm %s2074_s5, %s1291_s9 }
 0x2d5   : > { %796 = vmax.xlane.f32.xlu0 %v795_v29 }
 0x2d9   : > { %967 = vmax.xlane.f32.xlu0 %v966_v30 }
 0x2ef   : > { %975 = vrot.lane.b32.xlu0 %v1952_v13, %s1703_s16  ;;  %s1147_s16 = scalar_lea.sflag [#allocation6], %s1924_s13 }
 0x32d   : > { %v460_v31 = vpop.xlane.xlu0 %459 }
 0x32e   : > { %v461_v32 = vsub.f32 %v454_v22, %v460_v31 }
 0x330   : > { %v462_v33 = vmul.f32 1.442695, %v461_v32 }
 0x331   : > { %v634_v35 = vpop.permute.xlu0 %633 }
 0x332   : > { %1496 = vpow2.f32 %v462_v33 }
 0x33c   : > { %v1497_v34 = vpop.eup %1496 }
 0x33d   : > { %1339 = vmatmul.mubr.msk.f32.vlgmr.msra.gmra.mrb[2].mxu1 %vm382_vm3, %v1497_v34  ;;  %v464_v58 = vsel %vm382_vm3, %v1497_v34, 0.0 }
 0x33e   : > { %1342 = vmatpush3.xpose.msk.msra.mxu1 %vm382_vm3, %v549_v16  ;;  %1343 = vmatprep.mubr.msk.f32.mxu1 %vm1692_vm0, %v1693_v1 }
 0x33f   : > { %1346 = vmatprep.subr.mxu1 %v1693_v1 }
 0x341   : > { %1344 = vmatmul.mubr.msk.f32.vlgmr.msra.gmra.mrb[4].mxu1 %vm382_vm3, %v547_v17 }
 0x342   : > { %1347 = vmatpush3.msra.mxu1 %v634_v35  ;;  %1348 = vmatprep.mubr.msk.f32.mxu1 %vm1692_vm0, %v1693_v1 }
 0x343   : > { %1356 = vmatprep.subr.mxu1 %v1693_v1 }
 0x362   : > { %v797_v41 = vpop.xlane.xlu0 %796 }
 0x363   : > { %v798_v42 = vsub.f32 %v791_v25, %v797_v41 }
 0x365   : > { %v799_v43 = vmul.f32 1.442695, %v798_v42 }
 0x366   : > { %v968_v46 = vpop.xlane.xlu0 %967 }
 0x367   : > { %1498 = vpow2.f32 %v799_v43  ;;  %v969_v47 = vsub.f32 %v962_v27, %v968_v46 }
 0x369   : > { %v970_v50 = vmul.f32 1.442695, %v969_v47 }
 0x36a   : > { %v976_v56 = vpop.permute.xlu0 %975 }
 0x371   : > { %v1499_v44 = vpop.eup %1498 }
 0x372   : > { %v801_v45 = vsel %vm382_vm3, %v1499_v44, 0.0 }
 0x410   : > { %v539_v36 = vpop.f32.mrb[2].mxu1 }
 0x411   : > { %v1340_v37 = vpop.f32.mrb[3].mxu1 }
 0x414   : > { %v620_v38 = vpop.f32.mrb[4].mxu1 }
 0x415   : > { %v1345_v39 = vpop.f32.mrb[5].mxu1  ;;  %v624_v40 = vsel %vm382_vm3, %v620_v38, -inf }
 0x416   : > { %625 = vmax.xlane.f32.xlu1 %v624_v40 }
 0x427   : > { %804 = vrot.lane.b32.xlu1 %v1952_v13, %s1704_s17  ;;  %s1602_s17 = sshll.u32 %s1708_s25, 4  ;;  %s1603_s17 = int_to_ptr.vmem [resolvable:$false] %s1602_s17 }
 0x428   : > { %p1605_p3 = scmp.lt.s32.totalorder %s2021_s15, %s1603_s17 }
 0x44b   : > { %802 = vadd.xlane.f32.xlu1 %v801_v45 }
 0x4a3   : > { %v626_v48 = vpop.xlane.xlu1 %625 }
 0x4a4   : > { %v627_v49 = vsub.f32 %v620_v38, %v626_v48 }
 0x4a6   : > { %v628_v51 = vmul.f32 1.442695, %v627_v49 }
 0x4a7   : > { %v805_v53 = vpop.permute.xlu1 %804 }
 0x4a8   : > { %1500 = vpow2.f32 %v628_v51 }
 0x4a9   : > { %1502 = vpow2.f32 %v970_v50 }
 0x4b2   : > { %v1501_v52 = vpop.eup %1500 }
 0x4b3   : > { %1349 = vmatmul.mubr.msk.f32.vlgmr.msra.gmra.mrb[6].mxu1 %vm382_vm3, %v1501_v52  ;;  %v630_v54 = vsel %vm382_vm3, %v1501_v52, 0.0  ;;  %v1503_v55 = vpop.eup %1502 }
 0x4b4   : > { %1357 = vmatpush3.msra.mxu1 %v805_v53  ;;  %631 = vadd.xlane.f32.xlu0 %v630_v54  ;;  %v972_v57 = vsel %vm382_vm3, %v1503_v55, 0.0 }
 0x4b5   : > { %1358 = vmatprep.mubr.msk.f32.mxu1 %vm1692_vm0, %v1693_v1  ;;  %1366 = vmatprep.subr.mxu1 %v1693_v1 }
 0x4b7   : > { %1359 = vmatmul.mubr.msk.f32.vlgmr.msra.gmra.mrb[8].mxu1 %vm382_vm3, %v1499_v44 }
 0x4b8   : > { %1367 = vmatpush3.msra.mxu1 %v976_v56  ;;  %973 = vadd.xlane.f32.xlu0 %v972_v57 }
 0x4b9   : > { %1368 = vmatprep.mubr.msk.f32.mxu1 %vm1692_vm0, %v1693_v1  ;;  %v1389_v1 = vpack.c.bf16 %v1061_v4, %v1060_v3 }
 0x4bb   : > { %1369 = vmatmul.mubr.msk.f32.vlgmr.msra.gmra.mrb[10].mxu1 %vm382_vm3, %v1503_v55  ;;  %1390 = vmatpush3.bf16.msra.mxu0 %v1389_v1 }
 0x4bc   : > { %465 = vadd.xlane.f32.xlu0 %v464_v58  ;;  %1391 = vmatprep.subr.bf16.mxu0 %v1691_v0 }
 0x4bf   : > { %1393 = vmatpush3.bf16.msra.mxu0 %v1392_v9 }
 0x4d8   : > { %v803_v2 = vpop.xlane.xlu1 %802 }
 0x541   : > { %v632_v59 = vpop.xlane.xlu0 %631 }
 0x545   : > { %v974_v60 = vpop.xlane.xlu0 %973 }
 0x549   : > { %v466_v61 = vpop.xlane.xlu0 %465 }
 0x54a   : > { %1504 = vrcp.f32 %v466_v61 }
 0x54b   : > { %1506 = vrcp.f32 %v632_v59 }
 0x54c   : > { %1508 = vrcp.f32 %v803_v2 }
 0x54d   : > { %1510 = vrcp.f32 %v974_v60 }
 0x554   : > { %v1505_v62 = vpop.eup %1504 }
 0x555   : > { %v544_v63 = vmul.f32 %v1505_v62, %v539_v36  ;;  %v1507_v7 = vpop.eup %1506 }
 0x556   : > { %v1509_v12 = vpop.eup %1508 }
 0x557   : > { %545 = vst.msk [vmem:[#allocation3] sm:$0xff] %vm382_vm3, %v544_v63  ;;  %v1511_v16 = vpop.eup %1510 }
 0x586   : > { %v705_v8 = vpop.f32.mrb[6].mxu1 }
 0x587   : > { %v710_v10 = vmul.f32 %v1507_v7, %v705_v8  ;;  %v1350_v11 = vpop.f32.mrb[7].mxu1 }
 0x589   : > { %712 = vrot.lane.b32.xlu0 %v710_v10, %s1705_s26  ;;  %s1604_s26 = scalar_lea.vmem %s1603_s17, 256 }
 0x58a   : > { %v876_v13 = vpop.f32.mrb[8].mxu1  ;;  %p1606_p5 = scmp.lt.s32.totalorder %s1604_s26, %s1598_s21 }
 0x58b   : > { %v881_v14 = vmul.f32 %v1509_v12, %v876_v13  ;;  %v1360_v15 = vpop.f32.mrb[9].mxu1 }
 0x58c   : > { %p1607_p9 = por %p1606_p5, %p1605_p3 }
 0x58d   : > { %883 = vrot.lane.b32.xlu1 %v881_v14, %s1706_s28 }
 0x58e   : > { %v1047_v17 = vpop.f32.mrb[10].mxu1  ;;  %p1608_p11 = pnand %p1607_p9, %p1601_p10 }
 0x58f   : > { %v1052_v18 = vmul.f32 %v1511_v16, %v1047_v17  ;;  %v1370_v19 = vpop.f32.mrb[11].mxu1 }
 0x591   : > { %1054 = vrot.lane.b32.xlu0 %v1052_v18, %s1707_s30 }
 0x5fb   : > { %v713_v20 = vpop.permute.xlu0 %712 }
 0x5fc   : > { %716 = vst.msk [vmem:[#allocation3] sm:$0xff] %vm715_vm4, %v713_v20 }
 0x5ff   : > { %v884_v0 = vpop.permute.xlu1 %883 }
 0x600   : > { %887 = vst.msk [vmem:[#allocation3] sm:$0xff] %vm886_vm5, %v884_v0 }
 0x603   : > { %v1055_v21 = vpop.permute.xlu0 %1054 }
 0x604   : > { %1058 = vst.msk [vmem:[#allocation3] sm:$0xff] %vm1057_vm6, %v1055_v21 }
 0x60b   : > { %v1059_v22 = vld [vmem:[#allocation3] sm:$0xff] }
 0x60c   : > { %1380 = vmatmul.mubr.msk.f32.vlgmr.msra.gmra.mrb[6].mxu0 %vm299_vm1, %v1059_v22 }
 0x6df   : > { %v1141_v24 = vpop.f32.mrb[6].mxu0 }
 0x6e0   : > { %v1142_v25 = vadd.f32 %v1288_v23, %v1141_v24  ;;  %v1381_v26 = vpop.f32.mrb[7].mxu0 }
 0x6e2   : > { %1145 = vst.msk [vmem:[%s282_s11] sm:$0xff] %vm299_vm1, %v1142_v25 }
 0x6e3   : > { %1611 = shalt.err (!%p1608_p11)
}
 0x6e4   : > { %s1612_s13 = scalar_lea.hbm %s2019_s10, 128  ;;  %s1616_s24 = scalar_lea.hbm %s2074_s5, 256 }
 0x6e5   : > { %p1613_p0 = scmp.ne.s32.totalorder %s2019_s10, %s1612_s13  ;;  %p1617_p6 = scmp.lt.u32.totalorder %s2019_s10, %s2074_s5 }
 0x6e6   : > { %p1618_p7 = scmp.lt.u32.totalorder %s1616_s24, %s1612_s13  ;;  %p1620_p8 = scmp.lt.u32.totalorder %s1612_s13, %s2019_s10 }
 0x6e7   : > { %p1614_p4 = pnand %p1613_p0, %p2089_p12 }
 0x6e8   : > { %p1619_p2 = por %p1618_p7, %p1617_p6 }
 0x6e9   : > { %p1615_p13 = pneg %p1614_p4 }
 0x6ea   : > { %p1621_p1 = por %p1620_p8, %p1619_p2 }
 0x6ec   : > { %p1622_p10 = pnand %p1621_p1, %p1615_p13 }
 0x6ee   : > { %1625 = shalt.err (!%p1622_p10)
}
 0x6ef   : > { %1404 = dma.vmem_to_hbm [thread:$0]  (%p2089_p12), %s2021_s15, 128, %s2019_s10, %s1147_s16  }
 0x6f0 PF: > { %s1173_s11 = sand.u32 1, %s1664_s18   ;;  %p2090_p3 = scmp.ne.s32.totalorder %s2082_s29, 0 }
 0x6f1   : > { %p2091_p5 = scmp.ge.s32.totalorder %s1684_s23, 2  ;;  %s1174_s27 = scalar_lea.sflag [#allocation6], %s1173_s11 }
 0x6f3   : > { %p1418_p9 = pnand %p2091_p5, %p2090_p3 }
 0x6f5   : > { %1659 = dma.done.wait (!%p1418_p9), %s1174_s27, 128  }
 0x6f6   : > { %1661 = vsyncadd (!%p1418_p9), %s1174_s27, 4294967168  ;;  %s22_s23 = sadd.s32 1, %s1684_s23   ;;  %s2092_s18 = smov %s1668_s19 }
 0x6f7   : > { %p19_p11 = scmp.ge.s32.totalorder %s22_s23, 4   ;;  %s2093_s19 = smov %s1672_s20 }
 0x6f8   : > { %s2094_s20 = smov %s1881_s6  ;;  %s2095_s21 = smov %s1680_s22 }
 0x6f9   : > { %s2096_s22 = smov %s2098_s12  ;;  %21 = sbr.rel (!%p19_p11) target bundleno = 7 (0x7), region = 98 }
 0x700   :  { %1179 = vsyncpa [#allocation5], 1 }
 0x701   :  { %1181 = vsyncpa [#allocation5 + $0x1], 1 }
 0x702   :  { %1182 = vsyncpa [#allocation8], 1 }
 0x703   :  { %1183 = vsyncpa [#allocation6], 1 }
 0x704   :  { %1185 = vsyncpa [#allocation6 + $0x1], 1 }

</bundles_post_ra>
